<compile_context>
chip_gen: v7x
topology: tpu7x:2x2x1
jax: 0.10.0
libtpu: 0.0.40
codegen_flags: <defaults>
</compile_context>

<pallas_src>
from functools import partial

import jax
import jax.numpy as jnp
from jax.experimental import pallas as pl
from jax.experimental.pallas import tpu as pltpu


# ----------------------------------------------------------------------------
# Block-size selection for the streaming fallback: largest multiple-of-128
# divisor of sample_rate whose sublane-padded (8, bn) f32 block stays small
# enough for double-buffered in+out tiles under every generation's default
# scoped-VMEM limit (v5e 16 MiB default, v7x 64 MiB physical).
# ----------------------------------------------------------------------------
def _pick_block_n(sample_rate, max_block_bytes=2 << 20):
    # VMEM blocks are sublane-padded to 8 rows for C <= 8, hence the 4*8.
    cap = max(128, (max_block_bytes // (4 * 8)) // 128 * 128)
    best = 0
    d = 128
    while d <= sample_rate:
        if sample_rate % d == 0 and d <= cap:
            best = d
        d += 128
    if best == 0:
        raise ValueError("sample_rate must have a multiple-of-128 divisor")
    return best


# ----------------------------------------------------------------------------
# Kernel 1: spectral shaping + Parseval mean-square of the colored noise.
# spec carried as two real planes packed into one (2, F) array (no complex
# dtype on TPU); f_decay is a runtime scalar in SMEM; log_base is a static
# per-module (1, F) VMEM input.
# ----------------------------------------------------------------------------
def _spec_shape_kernel(fd_ref, logb_ref, spec_ref, shaped_ref, ms_ref, *, inv_n2):
    # mask = 1 / base**f_decay == exp(-f_decay * log(base)): one EUP op/element.
    shaped = spec_ref[...] * jnp.exp(-fd_ref[0] * logb_ref[...])
    shaped_ref[...] = shaped
    # Parseval (N even):
    #   sum(sig^2) = (|X_0|^2 + 2*sum_{1..N/2-1}|X_k|^2 + |X_{N/2}|^2) / N
    # => mean(sig^2) = (2*sum_all - edge_terms) / N^2  with the (2,F) packing.
    sq = shaped * shaped
    total = jnp.sum(sq, keepdims=True)                       # (1, 1)
    edge = jnp.sum(sq[:, :1] + sq[:, -1:], keepdims=True)    # (1, 1)
    ms_ref[...] = (2.0 * total - edge) * inv_n2


def pallas_spec_shape(spec_ri, f_decay, log_base, sample_rate):
    vmem = pl.BlockSpec(memory_space=pltpu.MemorySpace.VMEM)
    kernel = partial(_spec_shape_kernel,
                     inv_n2=1.0 / (float(sample_rate) * float(sample_rate)))
    return pl.pallas_call(
        kernel,
        out_shape=(jax.ShapeDtypeStruct(spec_ri.shape, jnp.float32),
                   jax.ShapeDtypeStruct((1, 1), jnp.float32)),
        in_specs=[pl.BlockSpec(memory_space=pltpu.MemorySpace.SMEM), vmem, vmem],
        out_specs=(vmem, vmem),
    )(jnp.reshape(f_decay.astype(jnp.float32), (1,)), log_base, spec_ri)


# ----------------------------------------------------------------------------
# Kernel 2a: VMEM-resident single-pass  rms(waveform) + scale + add.
# Whole waveform lives in VMEM for the duration of the call, so it is read
# from HBM exactly once.  Chunking is along the lane (time) axis in units of
# one noise period so the tiled/truncated noise is a simple static slice.
# ----------------------------------------------------------------------------
def _resident_kernel(g_ref, w_ref, noise_ref, o_ref, *, chunk, num_samples,
                     inv_total):
    # Pass 1: mean-square of the waveform.  Joint over channels and time,
    # matching the reference calculate_rms(waveform) (single RMS per example).
    total = jnp.zeros((1, 1), jnp.float32)
    for t0 in range(0, num_samples, chunk):
        ln = min(chunk, num_samples - t0)
        x = w_ref[:, t0:t0 + ln].astype(jnp.float32)
        total = total + jnp.sum(x * x, keepdims=True)

    # scale = rms(waveform) * 10**(-snr/20) / (rms(noise) + eps); the last two
    # factors were folded into g_ref on the host (Parseval-based noise rms).
    scale = g_ref[0] * jnp.sqrt(total * inv_total)            # (1, 1)
    snoise = scale * noise_ref[...]                           # pre-scaled period (1, sr)

    # Pass 2: out = waveform + scaled noise (tiled/truncated to num_samples),
    # read again from the VMEM-resident copy (no extra HBM traffic).
    for t0 in range(0, num_samples, chunk):
        ln = min(chunk, num_samples - t0)
        x = w_ref[:, t0:t0 + ln].astype(jnp.float32)
        o_ref[:, t0:t0 + ln] = (x + snoise[:, :ln]).astype(o_ref.dtype)


def _resident_add_noise(waveform, sig, gain_eff, sample_rate, vmem_limit):
    c, num_samples = waveform.shape
    g = jnp.reshape(gain_eff.astype(jnp.float32), (1,))
    noise = sig.astype(jnp.float32).reshape(1, sample_rate)
    kernel = partial(_resident_kernel, chunk=sample_rate, num_samples=num_samples,
                     inv_total=1.0 / float(c * num_samples))
    vmem = pl.BlockSpec(memory_space=pltpu.MemorySpace.VMEM)
    # TODO(synk): on v7x the single-invocation resident path runs on one
    # TensorCore; a core_map split over time halves would use both.
    return pl.pallas_call(
        kernel,
        out_shape=jax.ShapeDtypeStruct((c, num_samples), waveform.dtype),
        in_specs=[pl.BlockSpec(memory_space=pltpu.MemorySpace.SMEM), vmem, vmem],
        out_specs=vmem,
        compiler_params=pltpu.CompilerParams(vmem_limit_bytes=int(vmem_limit)),
    )(g, waveform, noise)


# ----------------------------------------------------------------------------
# Kernel 2b: streaming fallback (two pallas_calls) for long waveforms.
# ----------------------------------------------------------------------------
def _rms_kernel(w_ref, ms_ref, acc_ref, *, block_n, num_samples, inv_total,
                needs_mask):
    j = pl.program_id(0)

    @pl.when(j == 0)
    def _():
        acc_ref[...] = jnp.zeros_like(acc_ref)

    x = w_ref[...].astype(jnp.float32)
    if needs_mask:  # static: only emitted when T % block_n != 0
        col = jax.lax.broadcasted_iota(jnp.int32, x.shape, 1)
        x = jnp.where(j * block_n + col < num_samples, x, 0.0)
    # Elementwise accumulation (pure VPU per step); one deferred reduce below.
    # TODO(synk): on v5e a per-step lane-reduce into a narrow accumulator would
    # move work off the single vst slot onto the idle XLU.
    acc_ref[...] += x * x

    @pl.when(j == pl.num_programs(0) - 1)
    def _():
        ms_ref[...] = jnp.sum(acc_ref[...], keepdims=True) * inv_total


def _add_kernel(w_ref, sbank_ref, o_ref, *, n_rows):
    j = pl.program_id(0)
    row = 0 if n_rows == 1 else j % n_rows           # modular noise tiling
    noise = sbank_ref[pl.ds(row, 1), :]              # (1, block_n), pre-scaled
    o_ref[...] = (w_ref[...].astype(jnp.float32) + noise).astype(o_ref.dtype)


def _streaming_add_noise(waveform, sig, gain_eff, sample_rate):
    c, num_samples = waveform.shape
    bn = _pick_block_n(sample_rate)
    n_rows = sample_rate // bn
    nblk = pl.cdiv(num_samples, bn)

    # Pass 1: waveform mean-square (reads the waveform once).
    rms_kernel = partial(_rms_kernel, block_n=bn, num_samples=num_samples,
                         inv_total=1.0 / float(c * num_samples),
                         needs_mask=(num_samples % bn != 0))
    wave_ms = pl.pallas_call(
        rms_kernel,
        out_shape=jax.ShapeDtypeStruct((1, 1), jnp.float32),
        grid=(nblk,),
        in_specs=[pl.BlockSpec((c, bn), lambda j: (0, j))],
        out_specs=pl.BlockSpec((1, 1), lambda j: (0, 0)),
        scratch_shapes=[pltpu.VMEM((c, bn), jnp.float32)],
        compiler_params=pltpu.CompilerParams(
            dimension_semantics=("arbitrary",)),
    )(waveform)

    # Scalar glue + one-time pre-scale of the noise bank (sample_rate elements).
    scale = gain_eff * jnp.sqrt(wave_ms[0, 0])
    sbank = (scale * sig.astype(jnp.float32)).reshape(n_rows, bn)

    # Pass 2: streaming add (reads waveform once, writes output once).
    add_kernel = partial(_add_kernel, n_rows=n_rows)
    return pl.pallas_call(
        add_kernel,
        out_shape=jax.ShapeDtypeStruct((c, num_samples), waveform.dtype),
        grid=(nblk,),
        in_specs=[pl.BlockSpec((c, bn), lambda j: (0, j)),
                  pl.BlockSpec((n_rows, bn), lambda j: (0, 0))],  # bank fetched once
        out_specs=pl.BlockSpec((c, bn), lambda j: (0, j)),
        compiler_params=pltpu.CompilerParams(
            dimension_semantics=("parallel",)),   # both TCs on v7x; no-op elsewhere
    )(waveform, sbank)


# ----------------------------------------------------------------------------
# Dispatch: VMEM-resident single pass when the footprint fits the budget,
# streaming two-call fallback otherwise.
# ----------------------------------------------------------------------------
def pallas_add_noise(waveform, sig, gain_eff, sample_rate, *,
                     force_streaming=False,
                     max_resident_bytes=24 << 20,
                     max_static_chunks=64):
    c, num_samples = waveform.shape
    pad_c = ((c + 7) // 8) * 8            # VMEM buffers are sublane-padded
    t_pad = ((num_samples + 127) // 128) * 128
    sr_pad = ((sample_rate + 127) // 128) * 128
    itemsize = jnp.dtype(waveform.dtype).itemsize
    # in + out resident buffers + noise/scaled-noise/chunk temporaries + margin.
    need = 2 * pad_c * t_pad * itemsize + 4 * 8 * sr_pad * 4 + (1 << 20)
    reps = -(-num_samples // sample_rate)
    if (not force_streaming) and need <= max_resident_bytes \
            and reps <= max_static_chunks:
        # Budget is conservative for v7x (64 MiB physical VMEM); v5e/v6e have
        # 128 MiB and could raise max_resident_bytes.
        vmem_limit = int(max(2 * need + (8 << 20), 32 << 20))
        return _resident_add_noise(waveform, sig, gain_eff, sample_rate,
                                   vmem_limit)
    return _streaming_add_noise(waveform, sig, gain_eff, sample_rate)


# ----------------------------------------------------------------------------
# Module wrapper (parameter sampling + FFT glue in plain JAX).
# ----------------------------------------------------------------------------
class AddColoredNoise:
    def __init__(self, min_snr_in_db=3.0, max_snr_in_db=30.0,
                 min_f_decay=-2.0, max_f_decay=2.0, p=0.5, sample_rate=16000,
                 force_streaming=False, max_resident_bytes=24 << 20):
        if min_snr_in_db > max_snr_in_db:
            raise ValueError("min_snr_in_db must not be greater than max_snr_in_db")
        if min_f_decay > max_f_decay:
            raise ValueError("min_f_decay must not be greater than max_f_decay")
        if sample_rate % 128 != 0:
            # TODO(synk): sample rates that are not multiples of 128 need a
            # wrap-around noise slice in the streaming fallback; not implemented.
            raise ValueError("sample_rate must be a multiple of 128")
        self.min_snr_in_db = min_snr_in_db
        self.max_snr_in_db = max_snr_in_db
        self.min_f_decay = min_f_decay
        self.max_f_decay = max_f_decay
        self.p = p
        self.sample_rate = sample_rate
        self.force_streaming = force_streaming
        self.max_resident_bytes = max_resident_bytes

        # Static per sample_rate: log(linspace(1, sqrt(sr/2), F)).
        f_bins = sample_rate // 2 + 1
        self._log_base = jnp.log(
            jnp.linspace(1.0, (sample_rate / 2.0) ** 0.5, f_bins,
                         dtype=jnp.float32)).reshape(1, f_bins)
        self._forward = jax.jit(self._forward_impl)

    def _augment(self, waveform, k_snr, k_fd, k_noise):
        # randomize_parameters()
        snr_in_db = jax.random.uniform(
            k_snr, (), jnp.float32, self.min_snr_in_db, self.max_snr_in_db)
        f_decay = jax.random.uniform(
            k_fd, (), jnp.float32, self.min_f_decay, self.max_f_decay)

        # _gen_noise: base gaussian noise of length sample_rate.
        base = jax.random.normal(k_noise, (self.sample_rate,), jnp.float32)
        # TODO(synk): rfft/irfft have no Pallas primitive; done with jnp.fft (glue).
        spec = jnp.fft.rfft(base)
        spec_ri = jnp.stack([jnp.real(spec), jnp.imag(spec)]).astype(jnp.float32)
        shaped_ri, sig_ms = pallas_spec_shape(
            spec_ri, f_decay, self._log_base, self.sample_rate)
        sig = jnp.fft.irfft(shaped_ri[0] + 1j * shaped_ri[1]).astype(jnp.float32)

        # rms(noise) via Parseval (computed inside the spec-shaping kernel);
        # fold 1/(rms+eps) and the SNR gain into one scalar so rms_normalize
        # never rescales the signal explicitly.  eps matches rms_normalize.
        sig_rms = jnp.sqrt(jnp.maximum(sig_ms[0, 0], 0.0))
        gain_eff = (10.0 ** (-snr_in_db / 20.0)) / (sig_rms + 1e-8)

        return pallas_add_noise(
            waveform, sig, gain_eff, self.sample_rate,
            force_streaming=self.force_streaming,
            max_resident_bytes=self.max_resident_bytes)

    def _forward_impl(self, waveform, key):
        k_gate, k_snr, k_fd, k_noise = jax.random.split(key, 4)
        u = jax.random.uniform(k_gate, (), jnp.float32)
        # Gate with lax.cond so FFTs + kernels are skipped when not applied.
        return jax.lax.cond(
            u <= self.p,
            lambda wf: self._augment(wf, k_snr, k_fd, k_noise),
            lambda wf: wf,
            waveform)

    def __call__(self, waveform, key):
        return self._forward(waveform, key)


if __name__ == "__main__":
    key = jax.random.PRNGKey(0)
    k_wave, k_mod = jax.random.split(key)

    channels, num_samples, sample_rate = 2, 3072, 2048
    waveform = 0.1 * jax.random.normal(k_wave, (channels, num_samples), jnp.float32)

    # Default: VMEM-resident single-pass path.
    module = AddColoredNoise(p=1.0, sample_rate=sample_rate)
    out = jax.block_until_ready(module(waveform, k_mod))

    assert out.shape == waveform.shape and out.dtype == waveform.dtype
    assert bool(jnp.all(jnp.isfinite(out)))
    assert bool(jnp.any(jnp.abs(out - waveform) > 1e-6))  # noise really added

    # Cross-check: streaming fallback path (same key => same parameters/noise).
    module_s = AddColoredNoise(p=1.0, sample_rate=sample_rate, force_streaming=True)
    out_s = jax.block_until_ready(module_s(waveform, k_mod))
    assert bool(jnp.allclose(out, out_s, rtol=1e-4, atol=1e-4))

    print("KERNEL_OK")
</pallas_src>

<mosaic_0001>
module attributes {stable_mosaic.version = 11 : i64} {
  func.func @_spec_shape_kernel(%arg0: memref<1xf32, #tpu.memory_space<smem>>, %arg1: memref<1x1025xf32, #tpu.memory_space<vmem>>, %arg2: memref<2x1025xf32, #tpu.memory_space<vmem>>, %arg3: memref<2x1025xf32, #tpu.memory_space<vmem>>, %arg4: memref<1x1xf32, #tpu.memory_space<vmem>>) attributes {dimension_semantics = [], scalar_prefetch = 0 : i64, scratch_operands = 0 : i64, tpu.core_type = #tpu.core_type<tc>} {
    %c0 = arith.constant 0 : index
    %c0_0 = arith.constant 0 : index
    %0 = vector.load %arg2[%c0, %c0_0] : memref<2x1025xf32, #tpu.memory_space<vmem>>, vector<2x1025xf32>
    %c0_1 = arith.constant 0 : index
    %1 = memref.load %arg0[%c0_1] : memref<1xf32, #tpu.memory_space<smem>>
    %cst = arith.constant 0.000000e+00 : f32
    %2 = arith.subf %cst, %1 : f32
    %c0_2 = arith.constant 0 : index
    %c0_3 = arith.constant 0 : index
    %3 = vector.load %arg1[%c0_2, %c0_3] : memref<1x1025xf32, #tpu.memory_space<vmem>>, vector<1x1025xf32>
    %4 = vector.broadcast %2 : f32 to vector<1x1025xf32>
    %5 = arith.mulf %4, %3 : vector<1x1025xf32>
    %6 = math.exp %5 : vector<1x1025xf32>
    %7 = vector.broadcast %6 : vector<1x1025xf32> to vector<2x1025xf32>
    %8 = arith.mulf %0, %7 : vector<2x1025xf32>
    %c0_4 = arith.constant 0 : index
    %c0_5 = arith.constant 0 : index
    %9 = vector.load %arg3[%c0_4, %c0_5] : memref<2x1025xf32, #tpu.memory_space<vmem>>, vector<2x1025xf32>
    tpu.vector_store %arg3[%c0_4, %c0_5], %8 {strides = array<i32>} : memref<2x1025xf32, #tpu.memory_space<vmem>>, vector<2x1025xf32>,
    %10 = arith.mulf %8, %8 : vector<2x1025xf32>
    %11 = vector.shape_cast %10 : vector<2x1025xf32> to vector<1x2x1025xf32>
    %cst_6 = arith.constant dense<0.000000e+00> : vector<1xf32>
    %12 = vector.multi_reduction <add>, %11, %cst_6 [1, 2] : vector<1x2x1025xf32> to vector<1xf32>
    %13 = vector.shape_cast %12 : vector<1xf32> to vector<1x1x1xf32>
    %14 = vector.extract %13[0, 0, 0] : f32 from vector<1x1x1xf32>
    %15 = vector.broadcast %14 : f32 to vector<1x1xf32>
    %16 = vector.extract_strided_slice %10 {offsets = [0, 0], sizes = [2, 1], strides = [1, 1]} : vector<2x1025xf32> to vector<2x1xf32>
    %17 = vector.extract_strided_slice %10 {offsets = [0, 1024], sizes = [2, 1], strides = [1, 1]} : vector<2x1025xf32> to vector<2x1xf32>
    %18 = arith.addf %16, %17 : vector<2x1xf32>
    %19 = vector.shape_cast %18 : vector<2x1xf32> to vector<1x2x1xf32>
    %cst_7 = arith.constant dense<0.000000e+00> : vector<1xf32>
    %20 = vector.multi_reduction <add>, %19, %cst_7 [1, 2] : vector<1x2x1xf32> to vector<1xf32>
    %21 = vector.shape_cast %20 : vector<1xf32> to vector<1x1x1xf32>
    %22 = vector.extract %21[0, 0, 0] : f32 from vector<1x1x1xf32>
    %23 = vector.broadcast %22 : f32 to vector<1x1xf32>
    %cst_8 = arith.constant 2.000000e+00 : f32
    %24 = vector.broadcast %cst_8 : f32 to vector<1x1xf32>
    %25 = arith.mulf %24, %15 : vector<1x1xf32>
    %26 = arith.subf %25, %23 : vector<1x1xf32>
    %cst_9 = arith.constant 2.38418579E-7 : f32
    %27 = vector.broadcast %cst_9 : f32 to vector<1x1xf32>
    %28 = arith.mulf %26, %27 : vector<1x1xf32>
    %c0_10 = arith.constant 0 : index
    %c0_11 = arith.constant 0 : index
    %29 = vector.load %arg4[%c0_10, %c0_11] : memref<1x1xf32, #tpu.memory_space<vmem>>, vector<1x1xf32>
    tpu.vector_store %arg4[%c0_10, %c0_11], %28 {strides = array<i32>} : memref<1x1xf32, #tpu.memory_space<vmem>>, vector<1x1xf32>,
    return
  }
}

module attributes {stable_mosaic.version = 11 : i64} {
  func.func @_resident_kernel(%arg0: memref<1xf32, #tpu.memory_space<smem>>, %arg1: memref<2x3072xf32, #tpu.memory_space<vmem>>, %arg2: memref<1x2048xf32, #tpu.memory_space<vmem>>, %arg3: memref<2x3072xf32, #tpu.memory_space<vmem>>) attributes {dimension_semantics = [], scalar_prefetch = 0 : i64, scratch_operands = 0 : i64, tpu.core_type = #tpu.core_type<tc>} {
    %cst = arith.constant 0.000000e+00 : f32
    %0 = vector.broadcast %cst : f32 to vector<1x1xf32>
    %c0 = arith.constant 0 : index
    %c0_0 = arith.constant 0 : index
    %1 = vector.load %arg1[%c0, %c0_0] : memref<2x3072xf32, #tpu.memory_space<vmem>>, vector<2x2048xf32>
    %2 = arith.mulf %1, %1 : vector<2x2048xf32>
    %3 = vector.shape_cast %2 : vector<2x2048xf32> to vector<1x2x2048xf32>
    %cst_1 = arith.constant dense<0.000000e+00> : vector<1xf32>
    %4 = vector.multi_reduction <add>, %3, %cst_1 [1, 2] : vector<1x2x2048xf32> to vector<1xf32>
    %5 = vector.shape_cast %4 : vector<1xf32> to vector<1x1x1xf32>
    %6 = vector.extract %5[0, 0, 0] : f32 from vector<1x1x1xf32>
    %7 = vector.broadcast %6 : f32 to vector<1x1xf32>
    %8 = arith.addf %0, %7 : vector<1x1xf32>
    %c0_2 = arith.constant 0 : index
    %c2048 = arith.constant 2048 : index
    %9 = vector.load %arg1[%c0_2, %c2048] : memref<2x3072xf32, #tpu.memory_space<vmem>>, vector<2x1024xf32>
    %10 = arith.mulf %9, %9 : vector<2x1024xf32>
    %11 = vector.shape_cast %10 : vector<2x1024xf32> to vector<1x2x1024xf32>
    %cst_3 = arith.constant dense<0.000000e+00> : vector<1xf32>
    %12 = vector.multi_reduction <add>, %11, %cst_3 [1, 2] : vector<1x2x1024xf32> to vector<1xf32>
    %13 = vector.shape_cast %12 : vector<1xf32> to vector<1x1x1xf32>
    %14 = vector.extract %13[0, 0, 0] : f32 from vector<1x1x1xf32>
    %15 = vector.broadcast %14 : f32 to vector<1x1xf32>
    %16 = arith.addf %8, %15 : vector<1x1xf32>
    %c0_4 = arith.constant 0 : index
    %17 = memref.load %arg0[%c0_4] : memref<1xf32, #tpu.memory_space<smem>>
    %cst_5 = arith.constant 1.62760422E-4 : f32
    %18 = vector.broadcast %cst_5 : f32 to vector<1x1xf32>
    %19 = arith.mulf %16, %18 : vector<1x1xf32>
    %20 = math.sqrt %19 : vector<1x1xf32>
    %21 = vector.broadcast %17 : f32 to vector<1x1xf32>
    %22 = arith.mulf %21, %20 : vector<1x1xf32>
    %c0_6 = arith.constant 0 : index
    %c0_7 = arith.constant 0 : index
    %23 = vector.load %arg2[%c0_6, %c0_7] : memref<1x2048xf32, #tpu.memory_space<vmem>>, vector<1x2048xf32>
    %24 = vector.broadcast %22 : vector<1x1xf32> to vector<1x2048xf32>
    %25 = arith.mulf %24, %23 : vector<1x2048xf32>
    %c0_8 = arith.constant 0 : index
    %c0_9 = arith.constant 0 : index
    %26 = vector.load %arg1[%c0_8, %c0_9] : memref<2x3072xf32, #tpu.memory_space<vmem>>, vector<2x2048xf32>
    %27 = vector.broadcast %25 : vector<1x2048xf32> to vector<2x2048xf32>
    %28 = arith.addf %26, %27 : vector<2x2048xf32>
    %c0_10 = arith.constant 0 : index
    %c0_11 = arith.constant 0 : index
    %29 = vector.load %arg3[%c0_10, %c0_11] : memref<2x3072xf32, #tpu.memory_space<vmem>>, vector<2x2048xf32>
    tpu.vector_store %arg3[%c0_10, %c0_11], %28 {strides = array<i32>} : memref<2x3072xf32, #tpu.memory_space<vmem>>, vector<2x2048xf32>,
    %c0_12 = arith.constant 0 : index
    %c2048_13 = arith.constant 2048 : index
    %30 = vector.load %arg1[%c0_12, %c2048_13] : memref<2x3072xf32, #tpu.memory_space<vmem>>, vector<2x1024xf32>
    %31 = vector.extract_strided_slice %25 {offsets = [0, 0], sizes = [1, 1024], strides = [1, 1]} : vector<1x2048xf32> to vector<1x1024xf32>
    %32 = vector.broadcast %31 : vector<1x1024xf32> to vector<2x1024xf32>
    %33 = arith.addf %30, %32 : vector<2x1024xf32>
    %c0_14 = arith.constant 0 : index
    %c2048_15 = arith.constant 2048 : index
    %34 = vector.load %arg3[%c0_14, %c2048_15] : memref<2x3072xf32, #tpu.memory_space<vmem>>, vector<2x1024xf32>
    tpu.vector_store %arg3[%c0_14, %c2048_15], %33 {strides = array<i32>} : memref<2x3072xf32, #tpu.memory_space<vmem>>, vector<2x1024xf32>,
    return
  }
}

</mosaic_0001>

<bundles_post_ra>
// kernel: reverse.3
= control target key start
LH: loop header
LB: loop body
LE: loop exit
PB: predicated region body
PF: predicated region fallthrough
CT: control target
= control target key end

     0   :  { %v2_v0 = vlaneseq  ;;  %s98_s0 = inlined_call_operand.vmem [shape: f32[1024], index: 0, kind: input, shape index: {}]   ;;  %s99_s1 = inlined_call_operand.vmem [shape: f32[1024], index: 1, kind: output, shape index: {}]  }
   0x2   :  { %v3_v1 = vsub.s32 127, %v2_v0 }
   0x4   :  { %4 = vset.pattern.permute.xlu0 %v3_v1 }
   0x5   :  { %v32_v2 = vld [vmem:[%s98_s0] sm:$0xff] }
   0x6   :  { %33 = vst [vmem:[#allocation0] sm:$0xff] %v32_v2 }
   0xd   :  { %v38_v3 = vld [vmem:[#allocation0 + $0x7] ss:$-1 sm:$0xff] }
   0xe   :  { %39 = vperm.xlu0 %4, %v38_v3  }
  0x8d   :  { %v40_v4 = vpop.permute.xlu0 %39 }
  0x8e   :  { %70 = vst [vmem:[%s99_s1] sm:$0xff] %v40_v4 }

// kernel: branch_1_fun.2
= control target key start
LH: loop header
LB: loop body
LE: loop exit
PB: predicated region body
PF: predicated region fallthrough
CT: control target
= control target key end

     0   :  { %s351_s0 = inlined_call_operand.<no memory space> [shape: f32[1], index: 0, kind: input, shape index: {}]   ;;  %s352_s1 = inlined_call_operand.vmem [shape: f32[1,1025], index: 1, kind: input, shape index: {}]   ;;  %s353_s2 = inlined_call_operand.vmem [shape: f32[2,1025], index: 2, kind: input, shape index: {}]   ;;  %s354_s3 = inlined_call_operand.vmem [shape: f32[2,1025], index: 3, kind: output, shape index: {0}]   ;;  %s355_s4 = inlined_call_operand.hbm [shape: f32[1,1], index: 4, kind: output, shape index: {1}]  }
   0x1   :  { %s22_s17 = ssub.f32 0.0, %s351_s0  ;;  %v23_v0 = vld [vmem:[%s352_s1] sm:$0xff]  ;;  %v24_v1 = vld [vmem:[%s352_s1 + $0x8] sm:$0x1] }
   0x3   :  { %v25_v2 = vstv %s22_s17 }
   0x4   :  { %11 = vsyncpa [#allocation4], 0  ;;  %v26_v3 = vmul.f32 %v25_v2, %v23_v0  ;;  %v27_v4 = vmul.f32 %v25_v2, %v24_v1  ;;  %v34_v7 = vlaneseq  ;;  %v274_v8 = vmov 1983009808   ;;  %v20_v34 = vld [vmem:[%s353_s2 + $0x10] sm:$0x3] }
   0x5   :  { %v73_v9 = vunpack.c.l.s4 %v274_v8  ;;  %v18_v40 = vld [vmem:[%s353_s2] sm:$0xff]  ;;  %v19_v43 = vld [vmem:[%s353_s2 + $0x8] sm:$0xff]  ;;  %vm119_vm0 = vcmask 1024   ;;  %vm177_vm1 = vcmask 1041408   ;;  %s275_s6 = smov [#allocation3]   ;;  %vm220_vm2 = vcmask 0  }
   0x6   :  { %v28_v5 = vmul.f32 1.442695, %v26_v3  ;;  %v30_v6 = vmul.f32 1.442695, %v27_v4  ;;  %v35_v10 = vshrl.u32 %v34_v7, 7  ;;  %s230_s7 = sshll.u32 %s275_s6, 4  ;;  %s231_s7 = int_to_ptr.vmem [resolvable:$true] %s230_s7 }
   0x7   :  { %v74_v11 = vunpack.c.0.s8 %v73_v9  ;;  %s250_s8 = scalar_lea.vmem %s231_s7, 16  ;;  %s254_s9 = scalar_lea.vmem %s231_s7, 32 }
   0x8   :  { %246 = vpow2.f32 %v28_v5  ;;  %v36_v12 = vsub.s32 0, %v35_v10  ;;  %v40_v13 = vsub.s32 1, %v35_v10  ;;  %v44_v14 = vsub.s32 2, %v35_v10  ;;  %p251_p0 = scmp.ne.s32.totalorder %s231_s7, %s250_s8  ;;  %p255_p1 = scmp.lt.s32.totalorder %s231_s7, %s231_s7 }
   0x9   :  { %248 = vpow2.f32 %v30_v6  ;;  %v48_v15 = vsub.s32 3, %v35_v10  ;;  %v52_v16 = vsub.s32 4, %v35_v10  ;;  %v56_v17 = vsub.s32 5, %v35_v10  ;;  %p256_p2 = scmp.lt.s32.totalorder %s254_s9, %s250_s8 }
   0xa   :  { %v60_v18 = vsub.s32 6, %v35_v10  ;;  %v64_v19 = vsub.s32 7, %v35_v10  ;;  %v77_v21 = vsub.s32 %v74_v11, %v35_v10 }
   0xb   :  { %p257_p3 = por %p256_p2, %p255_p1 }
   0xd   :  { %p258_p4 = pnand %p257_p3, %p251_p0 }
  0x12   :  { %v247_v20 = vpop.eup %246 }
  0x13   :  { %v249_v22 = vpop.eup %248  ;;  %v37_v23 = vrot.slane %v247_v20, %v36_v12  ;;  %v41_v24 = vrot.slane %v247_v20, %v40_v13  ;;  %v45_v25 = vrot.slane %v247_v20, %v44_v14  ;;  %v49_v26 = vrot.slane %v247_v20, %v48_v15 }
  0x14   :  { %v53_v27 = vrot.slane %v247_v20, %v52_v16  ;;  %v57_v28 = vrot.slane %v247_v20, %v56_v17  ;;  %v61_v29 = vrot.slane %v247_v20, %v60_v18  ;;  %v65_v30 = vrot.slane %v247_v20, %v64_v19 }
  0x15   :  { %v69_v31 = vrot.slane %v249_v22, %v36_v12  ;;  %v70_v32 = vcombine.low %v37_v23, %v41_v24  ;;  %v71_v33 = vcombine.low %v45_v25, %v49_v26 }
  0x16   :  { %v87_v35 = vcombine.low %v53_v27, %v57_v28  ;;  %v88_v36 = vcombine.low %v61_v29, %v65_v30 }
  0x17   :  { %v78_v37 = vrot.slane %v70_v32, %v77_v21  ;;  %v85_v38 = vrot.slane %v71_v33, %v77_v21  ;;  %v110_v39 = vrot.slane %v69_v31, %v77_v21 }
  0x18   :  { %v95_v41 = vrot.slane %v87_v35, %v77_v21  ;;  %v102_v42 = vrot.slane %v88_v36, %v77_v21 }
  0x19   :  { %v86_v44 = vcombine.low %v78_v37, %v85_v38  ;;  %v116_v45 = vmul.f32 %v110_v39, %v20_v34 }
  0x1a   :  { %v103_v46 = vcombine.low %v95_v41, %v102_v42 }
  0x1b   :  { %v114_v47 = vmul.f32 %v86_v44, %v18_v40  ;;  %120 = vst.msk [vmem:[%s354_s3 + $0x10] sm:$0x3] %vm119_vm0, %v116_v45  ;;  %v123_v2 = vmul.f32 %v116_v45, %v116_v45 }
  0x1c   :  { %v115_v48 = vmul.f32 %v103_v46, %v19_v43 }
  0x1d   :  { %v121_v49 = vmul.f32 %v114_v47, %v114_v47  ;;  %117 = vst [vmem:[%s354_s3] sm:$0xff] %v114_v47  ;;  %v167_v8 = vrot.slane %v123_v2, %v77_v21 }
  0x1e   :  { %118 = vst [vmem:[%s354_s3 + $0x8] sm:$0xff] %v115_v48  ;;  %v122_v50 = vmul.f32 %v115_v48, %v115_v48 }
  0x1f   :  { %v127_v51 = vcombine.high %v121_v49, %v121_v49  ;;  %v134_v52 = vrot.slane %v121_v49, %v77_v21  ;;  %v193_v13 = vsel %vm119_vm0, %v167_v8, 0.0  ;;  %v205_v15 = vadd.f32 %v123_v2, %v121_v49 }
  0x20   :  { %v144_v53 = vcombine.high %v122_v50, %v122_v50  ;;  %v151_v56 = vrot.slane %v122_v50, %v77_v21 }
  0x21   :  { %v141_v54 = vrot.slane %v127_v51, %v77_v21  ;;  %v142_v55 = vcombine.high %v134_v52, %v134_v52  ;;  %v178_v57 = vsel %vm177_vm1, %v134_v52, 0.0  ;;  %v206_v17 = vsel %vm119_vm0, %v205_v15, 0.0 }
  0x22   :  { %v158_v62 = vrot.slane %v144_v53, %v77_v21  ;;  %v159_v63 = vcombine.high %v151_v56, %v151_v56  ;;  %v185_v3 = vsel %vm177_vm1, %v151_v56, 0.0 }
  0x23   :  { %v143_v58 = vcombine.high %v141_v54, %v141_v54  ;;  %v179_v59 = vsel %vm177_vm1, %v142_v55, 0.0  ;;  %v181_v60 = vsel %vm177_vm1, %v141_v54, 0.0 }
  0x24   :  { %v180_v61 = vadd.f32 %v179_v59, %v178_v57  ;;  %v160_v5 = vcombine.high %v158_v62, %v158_v62  ;;  %v187_v6 = vsel %vm177_vm1, %v159_v63, 0.0  ;;  %v189_v9 = vsel %vm177_vm1, %v158_v62, 0.0 }
  0x25   :  { %v183_v0 = vsel %vm177_vm1, %v143_v58, 0.0 }
  0x26   :  { %v182_v1 = vadd.f32 %v181_v60, %v180_v61  ;;  %v191_v11 = vsel %vm177_vm1, %v160_v5, 0.0 }
  0x28   :  { %v184_v4 = vadd.f32 %v183_v0, %v182_v1 }
  0x2a   :  { %v186_v7 = vadd.f32 %v185_v3, %v184_v4 }
  0x2c   :  { %v188_v10 = vadd.f32 %v187_v6, %v186_v7 }
  0x2e   :  { %v190_v12 = vadd.f32 %v189_v9, %v188_v10 }
  0x30   :  { %v192_v14 = vadd.f32 %v191_v11, %v190_v12 }
  0x32   :  { %v194_v16 = vadd.f32 %v193_v13, %v192_v14 }
  0x34   :  { %195 = vadd.xlane.f32.xlu0 %v194_v16 }
  0x38   :  { %207 = vadd.xlane.f32.xlu0 %v206_v17 }
  0xc1   :  { %v196_v18 = vpop.xlane.xlu0 %195 }
  0xc2   :  { %v197_v19 = vrot.slane %v196_v18, 4 }
  0xc4   :  { %v198_v20 = vadd.f32 %v197_v19, %v196_v18 }
  0xc5   :  { %v208_v22 = vpop.xlane.xlu0 %207 }
  0xc6   :  { %v199_v21 = vrot.slane %v198_v20, 2  ;;  %v209_v23 = vrot.slane %v208_v22, 4 }
  0xc8   :  { %v210_v24 = vadd.f32 %v209_v23, %v208_v22  ;;  %v200_v25 = vadd.f32 %v199_v21, %v198_v20 }
  0xca   :  { %v211_v26 = vrot.slane %v210_v24, 2  ;;  %v201_v27 = vrot.slane %v200_v25, 1 }
  0xcc   :  { %v212_v28 = vadd.f32 %v211_v26, %v210_v24  ;;  %v202_v29 = vadd.f32 %v201_v27, %v200_v25 }
  0xce   :  { %240 = vpush %v202_v29  ;;  %v213_v30 = vrot.slane %v212_v28, 1 }
  0xd0   :  { %v214_v31 = vadd.f32 %v213_v30, %v212_v28 }
  0xd2   :  { %242 = vpush %v214_v31 }
  0xff   :  { %s241_s2 = spop %240 }
 0x100   :  { %v204_v32 = vstv %s241_s2 }
 0x101   :  { %v217_v33 = vmul.f32 2.0, %v204_v32 }
 0x103   :  { %s243_s3 = spop %242 }
 0x104   :  { %v216_v34 = vstv %s243_s3 }
 0x105   :  { %v218_v35 = vsub.f32 %v217_v33, %v216_v34 }
 0x107   :  { %v219_v36 = vmul.f32 2.3841858e-07, %v218_v35 }
 0x109   :  { %221 = vst.msk [vmem:[#allocation3] sm:$0x1] %vm220_vm2, %v219_v36 }
 0x10a   :  { %261 = shalt.err (!%p258_p4)
}
 0x10b   :  { %s262_s12 = scalar_lea.hbm %s355_s4, 16 }
 0x10c   :  { %p263_p5 = scmp.ne.s32.totalorder %s355_s4, %s262_s12  ;;  %p266_p6 = scmp.lt.u32.totalorder %s262_s12, %s355_s4 }
 0x10e   :  { %p268_p7 = pnand %p266_p6, %p263_p5 }
 0x110   :  { %271 = shalt.err (!%p268_p7)
}
 0x111   :  { %233 = dma.vmem_to_hbm [thread:$0]  %s231_s7, 16, %s355_s4, [#allocation4]  }
 0x112   :  { %272 = dma.done.wait [#allocation4], 16  }
 0x113   :  { %273 = vsyncadd [#allocation4], 4294967280 }
 0x114   :  { %239 = vsyncpa [#allocation4], 1 }

// kernel: branch_1_fun.3
= control target key start
LH: loop header
LB: loop body
LE: loop exit
PB: predicated region body
PF: predicated region fallthrough
CT: control target
= control target key end

     0   :  { %v32_v1 = vlaneseq  ;;  %v442_v3 = vmov 1983009808   ;;  %s590_s0 = inlined_call_operand.<no memory space> [shape: f32[1], index: 0, kind: input, shape index: {}]   ;;  %s591_s1 = inlined_call_operand.vmem [shape: f32[2,3072], index: 1, kind: input, shape index: {}]   ;;  %s592_s2 = inlined_call_operand.vmem [shape: f32[1,2048], index: 2, kind: input, shape index: {}]   ;;  %s593_s3 = inlined_call_operand.hbm [shape: f32[2,3072], index: 3, kind: output, shape index: {}]  }
   0x1   :  { %v467_v0 = vld [vmem:[%s591_s1] sm:$0xff]  ;;  %v30_v4 = vunpack.c.l.s4 %v442_v3  ;;  %v474_v5 = vld [vmem:[%s591_s1 + $0x8] sm:$0xff] }
   0x2   :  { %v20_v2 = vmul.f32 %v467_v0, %v467_v0  ;;  %v476_v6 = vshrl.u32 %v32_v1, 7 }
   0x3   :  { %9 = vsyncpa [#allocation4], 0  ;;  %v31_v8 = vunpack.c.0.s8 %v30_v4  ;;  %v21_v9 = vmul.f32 %v474_v5, %v474_v5  ;;  %v486_v11 = vld [vmem:[%s591_s1 + $0x20] sm:$0xff]  ;;  %vm112_vm0 = vcmask 1041408   ;;  %v495_v15 = vld [vmem:[%s591_s1 + $0x10] sm:$0xff] }
   0x4   :  { %v28_v7 = vcombine.high %v20_v2, %v20_v2  ;;  %v157_v14 = vmul.f32 %v486_v11, %v486_v11  ;;  %v22_v24 = vmul.f32 %v495_v15, %v495_v15  ;;  %v509_v31 = vld [vmem:[%s591_s1 + $0x28] sm:$0xff]  ;;  %v519_v41 = vld [vmem:[%s591_s1 + $0x18] sm:$0xff] }
   0x5   :  { %v481_v10 = vsub.s32 %v31_v8, %v476_v6  ;;  %v45_v18 = vcombine.high %v21_v9, %v21_v9  ;;  %v158_v43 = vmul.f32 %v509_v31, %v509_v31  ;;  %v23_v50 = vmul.f32 %v519_v41, %v519_v41 }
   0x6   :  { %v161_v23 = vcombine.high %v157_v14, %v157_v14  ;;  %v62_v34 = vcombine.high %v22_v24, %v22_v24 }
   0x7   :  { %v35_v12 = vrot.slane %v20_v2, %v481_v10  ;;  %v42_v13 = vrot.slane %v28_v7, %v481_v10  ;;  %v52_v19 = vrot.slane %v21_v9, %v481_v10  ;;  %v59_v26 = vrot.slane %v45_v18, %v481_v10 }
   0x8   :  { %v168_v32 = vrot.slane %v157_v14, %v481_v10  ;;  %v175_v33 = vrot.slane %v161_v23, %v481_v10  ;;  %v69_v35 = vrot.slane %v22_v24, %v481_v10  ;;  %v76_v51 = vrot.slane %v62_v34, %v481_v10 }
   0x9   :  { %v43_v16 = vcombine.high %v35_v12, %v35_v12  ;;  %v44_v17 = vcombine.high %v42_v13, %v42_v13  ;;  %v113_v20 = vsel %vm112_vm0, %v35_v12, 0.0  ;;  %v116_v22 = vsel %vm112_vm0, %v42_v13, 0.0 }
   0xa   :  { %v60_v27 = vcombine.high %v52_v19, %v52_v19  ;;  %v120_v30 = vsel %vm112_vm0, %v52_v19, 0.0  ;;  %v61_v37 = vcombine.high %v59_v26, %v59_v26  ;;  %v176_v39 = vcombine.high %v168_v32, %v168_v32 }
   0xb   :  { %v114_v21 = vsel %vm112_vm0, %v43_v16, 0.0  ;;  %v118_v28 = vsel %vm112_vm0, %v44_v17, 0.0  ;;  %v203_v40 = vsel %vm112_vm0, %v168_v32, 0.0  ;;  %v124_v44 = vsel %vm112_vm0, %v59_v26, 0.0 }
   0xc   :  { %v115_v25 = vadd.f32 %v114_v21, %v113_v20  ;;  %v122_v38 = vsel %vm112_vm0, %v60_v27, 0.0  ;;  %v177_v45 = vcombine.high %v175_v33, %v175_v33  ;;  %v204_v46 = vsel %vm112_vm0, %v176_v39, 0.0 }
   0xd   :  { %v206_v47 = vsel %vm112_vm0, %v175_v33, 0.0  ;;  %v205_v49 = vadd.f32 %v204_v46, %v203_v40  ;;  %v77_v52 = vcombine.high %v69_v35, %v69_v35  ;;  %v126_v53 = vsel %vm112_vm0, %v61_v37, 0.0 }
   0xe   :  { %v117_v29 = vadd.f32 %v116_v22, %v115_v25  ;;  %v128_v56 = vsel %vm112_vm0, %v69_v35, 0.0  ;;  %v185_v57 = vrot.slane %v158_v43, %v481_v10  ;;  %v208_v58 = vsel %vm112_vm0, %v177_v45, 0.0 }
   0xf   :  { %v207_v55 = vadd.f32 %v206_v47, %v205_v49  ;;  %v78_v60 = vcombine.high %v76_v51, %v76_v51  ;;  %v79_v61 = vcombine.high %v23_v50, %v23_v50  ;;  %v86_v62 = vrot.slane %v23_v50, %v481_v10 }
  0x10   :  { %v119_v36 = vadd.f32 %v118_v28, %v117_v29  ;;  %v130_v63 = vsel %vm112_vm0, %v77_v52, 0.0  ;;  %v132_v3 = vsel %vm112_vm0, %v76_v51, 0.0  ;;  %v178_v4 = vcombine.high %v158_v43, %v158_v43 }
  0x11   :  { %v209_v2 = vadd.f32 %v208_v58, %v207_v55  ;;  %v193_v7 = vcombine.high %v185_v57, %v185_v57  ;;  %v210_v8 = vsel %vm112_vm0, %v185_v57, 0.0  ;;  %v93_v12 = vrot.slane %v79_v61, %v481_v10 }
  0x12   :  { %v121_v42 = vadd.f32 %v120_v30, %v119_v36  ;;  %v94_v13 = vcombine.high %v86_v62, %v86_v62  ;;  %v134_v14 = vsel %vm112_vm0, %v78_v60, 0.0  ;;  %v136_v18 = vsel %vm112_vm0, %v86_v62, 0.0  ;;  %v240_v62 = vld [vmem:[%s592_s2] sm:$0xff] }
  0x13   :  { %v211_v17 = vadd.f32 %v210_v8, %v209_v2  ;;  %v192_v19 = vrot.slane %v178_v4, %v481_v10  ;;  %v212_v20 = vsel %vm112_vm0, %v193_v7, 0.0  ;;  %v95_v22 = vcombine.high %v93_v12, %v93_v12 }
  0x14   :  { %v123_v48 = vadd.f32 %v122_v38, %v121_v42  ;;  %v138_v23 = vsel %vm112_vm0, %v94_v13, 0.0  ;;  %v140_v26 = vsel %vm112_vm0, %v93_v12, 0.0  ;;  %v256_v4 = vsub.s32 2, %v476_v6 }
  0x15   :  { %v213_v25 = vadd.f32 %v212_v20, %v211_v17  ;;  %v194_v27 = vcombine.high %v192_v19, %v192_v19  ;;  %v214_v28 = vsel %vm112_vm0, %v192_v19, 0.0  ;;  %v142_v30 = vsel %vm112_vm0, %v95_v22, 0.0 }
  0x16   :  { %v125_v54 = vadd.f32 %v124_v44, %v123_v48  ;;  %v260_v7 = vsub.s32 3, %v476_v6  ;;  %v264_v8 = vsub.s32 4, %v476_v6  ;;  %v272_v12 = vsub.s32 6, %v476_v6 }
  0x17   :  { %v215_v33 = vadd.f32 %v214_v28, %v213_v25  ;;  %v216_v34 = vsel %vm112_vm0, %v194_v27, 0.0  ;;  %v276_v13 = vsub.s32 7, %v476_v6 }
  0x18   :  { %v127_v59 = vadd.f32 %v126_v53, %v125_v54 }
  0x19   :  { %v217_v36 = vadd.f32 %v216_v34, %v215_v33 }
  0x1a   :  { %v129_v1 = vadd.f32 %v128_v56, %v127_v59  ;;  %v238_v59 = vstv %s590_s0  ;;  %s443_s0 = smov [#allocation3]  }
  0x1c   :  { %v131_v9 = vadd.f32 %v130_v63, %v129_v1  ;;  %v241_v63 = vld [vmem:[%s592_s2 + $0x8] sm:$0xff]  ;;  %v248_v1 = vsub.s32 0, %v476_v6  ;;  %s402_s2 = sshll.u32 %s443_s0, 4  ;;  %s403_s2 = int_to_ptr.vmem [resolvable:$true] %s402_s2 }
  0x1d   :  { %s418_s4 = scalar_lea.vmem %s403_s2, 768  ;;  %p423_p1 = scmp.lt.s32.totalorder %s403_s2, %s403_s2 }
  0x1e   :  { %v133_v16 = vadd.f32 %v132_v3, %v131_v9  ;;  %v252_v3 = vsub.s32 1, %v476_v6  ;;  %v268_v9 = vsub.s32 5, %v476_v6  ;;  %p419_p0 = scmp.ne.s32.totalorder %s403_s2, %s418_s4  ;;  %p424_p2 = scmp.lt.s32.totalorder %s418_s4, %s418_s4 }
  0x20   :  { %v135_v21 = vadd.f32 %v134_v14, %v133_v16  ;;  %p425_p3 = por %p424_p2, %p423_p1 }
  0x22   :  { %v137_v24 = vadd.f32 %v136_v18, %v135_v21  ;;  %p426_p4 = pnand %p425_p3, %p419_p0 }
  0x24   :  { %v139_v29 = vadd.f32 %v138_v23, %v137_v24 }
  0x26   :  { %v141_v32 = vadd.f32 %v140_v26, %v139_v29 }
  0x28   :  { %v143_v35 = vadd.f32 %v142_v30, %v141_v32 }
  0x2a   :  { %144 = vadd.xlane.f32.xlu0 %v143_v35 }
  0x2e   :  { %218 = vadd.xlane.f32.xlu0 %v217_v36 }
  0xb7   :  { %v145_v37 = vpop.xlane.xlu0 %144 }
  0xb8   :  { %v146_v38 = vrot.slane %v145_v37, 4 }
  0xba   :  { %v147_v39 = vadd.f32 %v146_v38, %v145_v37 }
  0xbb   :  { %v219_v40 = vpop.xlane.xlu0 %218 }
  0xbc   :  { %v148_v42 = vrot.slane %v147_v39, 2  ;;  %v220_v43 = vrot.slane %v219_v40, 4 }
  0xbe   :  { %v221_v44 = vadd.f32 %v220_v43, %v219_v40  ;;  %v149_v45 = vadd.f32 %v148_v42, %v147_v39 }
  0xc0   :  { %v222_v46 = vrot.slane %v221_v44, 2  ;;  %v150_v47 = vrot.slane %v149_v45, 1 }
  0xc2   :  { %v223_v48 = vadd.f32 %v222_v46, %v221_v44  ;;  %v151_v49 = vadd.f32 %v150_v47, %v149_v45 }
  0xc4   :  { %410 = vpush %v151_v49  ;;  %v224_v50 = vrot.slane %v223_v48, 1 }
  0xc6   :  { %v225_v51 = vadd.f32 %v224_v50, %v223_v48 }
  0xc8   :  { %412 = vpush %v225_v51 }
  0xf5   :  { %s411_s1 = spop %410 }
  0xf6   :  { %v153_v52 = vstv %s411_s1 }
  0xf9   :  { %s413_s24 = spop %412 }
  0xfa   :  { %v227_v53 = vstv %s413_s24 }
  0xfb   :  { %v228_v54 = vadd.f32 %v227_v53, %v153_v52 }
  0xfd   :  { %v230_v55 = vmul.f32 0.00016276042, %v228_v54 }
  0xff   :  { %416 = vrsqrt.f32 %v230_v55  ;;  %vm233_vm1 = vcmp.eq.f32.partialorder %v230_v55, inf  ;;  %v236_v58 = vand.u32 2147483648, %v230_v55  ;;  %vm235_vm2 = vcmp.eq.f32.partialorder %v230_v55, 0.0 }
 0x109   :  { %v417_v56 = vpop.eup %416 }
 0x10a   :  { %v232_v57 = vmul.f32 %v417_v56, %v230_v55 }
 0x10c   :  { %v234_v60 = vsel %vm233_vm1, %v230_v55, %v232_v57 }
 0x10d   :  { %v237_v61 = vsel %vm235_vm2, %v236_v58, %v234_v60 }
 0x10e   :  { %v239_v2 = vmul.f32 %v238_v59, %v237_v61 }
 0x110   :  { %v242_v14 = vmul.f32 %v240_v62, %v239_v2  ;;  %v243_v16 = vmul.f32 %v241_v63, %v239_v2 }
 0x112   :  { %v249_v17 = vrot.slane %v242_v14, %v248_v1  ;;  %v253_v18 = vrot.slane %v242_v14, %v252_v3  ;;  %v257_v19 = vrot.slane %v242_v14, %v256_v4  ;;  %v261_v20 = vrot.slane %v242_v14, %v260_v7 }
 0x113   :  { %v265_v21 = vrot.slane %v242_v14, %v264_v8  ;;  %v269_v22 = vrot.slane %v242_v14, %v268_v9  ;;  %v273_v23 = vrot.slane %v242_v14, %v272_v12  ;;  %v277_v24 = vrot.slane %v242_v14, %v276_v13 }
 0x114   :  { %v281_v25 = vrot.slane %v243_v16, %v248_v1  ;;  %v285_v26 = vrot.slane %v243_v16, %v252_v3  ;;  %v289_v27 = vrot.slane %v243_v16, %v256_v4  ;;  %v293_v28 = vrot.slane %v243_v16, %v260_v7 }
 0x115   :  { %v297_v29 = vrot.slane %v243_v16, %v264_v8  ;;  %v301_v30 = vrot.slane %v243_v16, %v268_v9  ;;  %v305_v32 = vrot.slane %v243_v16, %v272_v12  ;;  %v309_v33 = vrot.slane %v243_v16, %v276_v13 }
 0x116   :  { %v310_v34 = vcombine.low %v249_v17, %v253_v18  ;;  %v311_v6 = vcombine.low %v257_v19, %v261_v20  ;;  %v327_v35 = vcombine.low %v265_v21, %v269_v22  ;;  %v328_v36 = vcombine.low %v273_v23, %v277_v24 }
 0x117   :  { %v344_v37 = vcombine.low %v281_v25, %v285_v26  ;;  %v345_v38 = vcombine.low %v289_v27, %v293_v28  ;;  %v361_v39 = vcombine.low %v297_v29, %v301_v30  ;;  %v362_v40 = vcombine.low %v305_v32, %v309_v33 }
 0x118   :  { %v318_v42 = vrot.slane %v310_v34, %v481_v10  ;;  %v325_v43 = vrot.slane %v311_v6, %v481_v10  ;;  %v335_v44 = vrot.slane %v327_v35, %v481_v10  ;;  %v342_v45 = vrot.slane %v328_v36, %v481_v10 }
 0x119   :  { %v352_v46 = vrot.slane %v344_v37, %v481_v10  ;;  %v359_v47 = vrot.slane %v345_v38, %v481_v10  ;;  %v369_v48 = vrot.slane %v361_v39, %v481_v10  ;;  %v376_v49 = vrot.slane %v362_v40, %v481_v10 }
 0x11a   :  { %v326_v50 = vcombine.low %v318_v42, %v325_v43  ;;  %v343_v51 = vcombine.low %v335_v44, %v342_v45 }
 0x11b   :  { %v360_v52 = vcombine.low %v352_v46, %v359_v47  ;;  %v377_v53 = vcombine.low %v369_v48, %v376_v49 }
 0x11c   :  { %v382_v54 = vadd.f32 %v326_v50, %v467_v0  ;;  %v383_v55 = vadd.f32 %v343_v51, %v474_v5  ;;  %v392_v56 = vadd.f32 %v326_v50, %v486_v11  ;;  %v393_v57 = vadd.f32 %v343_v51, %v509_v31 }
 0x11d   :  { %v384_v58 = vadd.f32 %v360_v52, %v495_v15  ;;  %v385_v59 = vadd.f32 %v377_v53, %v519_v41 }
 0x11e   :  { %386 = vst [vmem:[#allocation3] sm:$0xff] %v382_v54  ;;  %387 = vst [vmem:[#allocation3 + $0x8] sm:$0xff] %v383_v55 }
 0x11f   :  { %394 = vst [vmem:[#allocation3 + $0x20] sm:$0xff] %v392_v56  ;;  %395 = vst [vmem:[#allocation3 + $0x28] sm:$0xff] %v393_v57 }
 0x120   :  { %388 = vst [vmem:[#allocation3 + $0x10] sm:$0xff] %v384_v58  ;;  %389 = vst [vmem:[#allocation3 + $0x18] sm:$0xff] %v385_v59 }
 0x121   :  { %429 = shalt.err (!%p426_p4)
}
 0x122   :  { %s430_s7 = scalar_lea.hbm %s593_s3, 768 }
 0x123   :  { %p431_p5 = scmp.ne.s32.totalorder %s593_s3, %s430_s7  ;;  %p434_p6 = scmp.lt.u32.totalorder %s430_s7, %s593_s3 }
 0x125   :  { %p436_p7 = pnand %p434_p6, %p431_p5 }
 0x127   :  { %439 = shalt.err (!%p436_p7)
}
 0x128   :  { %405 = dma.vmem_to_hbm [thread:$0]  %s403_s2, 768, %s593_s3, [#allocation4]  }
 0x129   :  { %440 = dma.done.wait [#allocation4], 768  }
 0x12a   :  { %441 = vsyncadd [#allocation4], 4294966528 }
 0x12b   :  { %409 = vsyncpa [#allocation4], 1 }

</bundles_post_ra>
